<compile_context>
chip_gen: v7x
topology: tpu7x:2x2x1
jax: 0.10.0
libtpu: 0.0.40
codegen_flags: <defaults>
</compile_context>

<pallas_src>
import numpy as np
import jax
import jax.numpy as jnp
from jax.experimental import pallas as pl
from jax.experimental.pallas import tpu as pltpu

_LANE = 128
# Target for the total double-buffered VMEM footprint of one grid step:
# 2 buffers x (x block + out block + f32 P block).  Large enough to amortize
# the ~0.35 us per-step overhead even at v7x's 3.2 TB/s, with headroom under
# the explicit limit below.
_VMEM_FOOTPRINT_BUDGET = 24 * 1024 * 1024
# Raised explicitly because v5e's scoped-VMEM default is only 16 MiB; 32 MiB
# is safe on every generation (v5e/v6e: 128 MiB physical, v7x: 64 MiB).
_VMEM_LIMIT_BYTES = 32 * 1024 * 1024


def build_positional_table(max_steps: int, max_dims: int) -> jnp.ndarray:
    """Sinusoidal table, identical to the PyTorch __init__ (kept in f32)."""
    if max_dims % 2 == 1:
        max_dims += 1
    p, i = np.meshgrid(np.arange(max_steps), np.arange(max_dims // 2))
    pos_emb = np.zeros((1, max_steps, max_dims))
    pos_emb[0, :, ::2] = np.sin(p / 10000 ** (2 * i / max_dims)).T
    pos_emb[0, :, 1::2] = np.cos(p / 10000 ** (2 * i / max_dims)).T
    return jnp.asarray(pos_emb, dtype=jnp.float32)


def _pos_enc_kernel(x_ref, p_ref, o_ref):
    # Elementwise hot path.  P stays f32 and the add runs in f32 so the result
    # matches PyTorch's type promotion; only the store casts.
    o_ref[...] = (x_ref[...].astype(jnp.float32) + p_ref[...]).astype(o_ref.dtype)


def _pick_tile(extent: int, gran: int, bytes_per_unit: int) -> int:
    """Tile size along the tiled extent.

    `bytes_per_unit` is the single-buffer VMEM cost (x + out + P blocks) per
    unit of `extent`.  The returned tile keeps the double-buffered footprint
    under _VMEM_FOOTPRINT_BUDGET, is a multiple of `gran` (or the full
    extent), and -- when the extent allows -- yields at least two grid steps
    so the "parallel" grid axis can shard across v7x's two TensorCores.
    """
    if extent < 2 * gran:
        return extent                                  # one full-extent block (always legal)
    cap = _VMEM_FOOTPRINT_BUDGET // (2 * max(1, bytes_per_unit))   # /2: double buffering
    cap = max(gran, (cap // gran) * gran)
    half = (extent + 1) // 2
    half = ((half + gran - 1) // gran) * gran          # ceil(extent/2) rounded up to gran
    return min(cap, half)                              # guarantees >= 2 grid steps


def positional_encoding(x: jnp.ndarray, P: jnp.ndarray) -> jnp.ndarray:
    """x: (B, S, D); P: (1, max_steps, max_dims). Returns x + P[:, :S, :D]."""
    B, S, D = x.shape
    N = S * D

    p_sl = P[:, :S, :D].astype(jnp.float32)            # same slice as the PyTorch forward
    out_dtype = jnp.result_type(x.dtype, jnp.float32)  # PyTorch promotion semantics

    x_isz = x.dtype.itemsize
    o_isz = jnp.dtype(out_dtype).itemsize
    # Sublane packing factor that is padding-free for every operand
    # (8 for f32, 16 if any operand is 16-bit).
    sub = 32 // min(x_isz, o_isz, 4)

    bytes_io = B * N * (x_isz + o_isz) + N * 4
    params = pltpu.CompilerParams(
        dimension_semantics=("parallel",),
        vmem_limit_bytes=_VMEM_LIMIT_BYTES,
    )
    cost = pl.CostEstimate(flops=B * N, transcendentals=0, bytes_accessed=bytes_io)

    if D % _LANE == 0:
        # Path A: natural layout is already lane-dense; tile over the sequence.
        ts = _pick_tile(S, sub, B * D * (x_isz + o_isz) + D * 4)
        out = pl.pallas_call(
            _pos_enc_kernel,
            out_shape=jax.ShapeDtypeStruct((B, S, D), out_dtype),
            grid_spec=pltpu.PrefetchScalarGridSpec(
                num_scalar_prefetch=0,
                grid=(pl.cdiv(S, ts),),
                in_specs=[
                    pl.BlockSpec((B, ts, D), lambda t: (0, t, 0)),
                    pl.BlockSpec((1, ts, D), lambda t: (0, t, 0)),
                ],
                out_specs=pl.BlockSpec((B, ts, D), lambda t: (0, t, 0)),
            ),
            compiler_params=params,
            cost_estimate=cost,
        )(x, p_sl)
        return out

    if N % sub == 0:
        # Path B: fold an exact sublane factor out of the flattened (S, D)
        # axis.  Blocks have exactly `sub` sublanes (no padding) and a
        # lane-dense last dim whenever L >= 128.  Contiguous reshapes on
        # row-major arrays lower to bitcasts.
        L = N // sub
        tn = _pick_tile(L, _LANE, B * sub * (x_isz + o_isz) + sub * 4)
        out = pl.pallas_call(
            _pos_enc_kernel,
            out_shape=jax.ShapeDtypeStruct((B, sub, L), out_dtype),
            grid_spec=pltpu.PrefetchScalarGridSpec(
                num_scalar_prefetch=0,
                grid=(pl.cdiv(L, tn),),
                in_specs=[
                    pl.BlockSpec((B, sub, tn), lambda t: (0, 0, t)),
                    pl.BlockSpec((1, sub, tn), lambda t: (0, 0, t)),
                ],
                out_specs=pl.BlockSpec((B, sub, tn), lambda t: (0, 0, t)),
            ),
            compiler_params=params,
            cost_estimate=cost,
        )(x.reshape(B, sub, L), p_sl.reshape(1, sub, L))
        return out.reshape(B, S, D)

    # Path C (rare: S*D not divisible by the sublane factor): 2-D flatten.
    # Small-B blocks are sublane-padded here, so budget with padded row counts.
    rows_x = -(-B // (32 // x_isz)) * (32 // x_isz)
    rows_o = -(-B // (32 // o_isz)) * (32 // o_isz)
    per_unit = rows_x * x_isz + rows_o * o_isz + 8 * 4      # P padded 1 -> 8 rows
    tn = _pick_tile(N, _LANE, per_unit)
    out = pl.pallas_call(
        _pos_enc_kernel,
        out_shape=jax.ShapeDtypeStruct((B, N), out_dtype),
        grid_spec=pltpu.PrefetchScalarGridSpec(
            num_scalar_prefetch=0,
            grid=(pl.cdiv(N, tn),),
            in_specs=[
                pl.BlockSpec((B, tn), lambda t: (0, t)),
                pl.BlockSpec((1, tn), lambda t: (0, t)),
            ],
            out_specs=pl.BlockSpec((B, tn), lambda t: (0, t)),
        ),
        compiler_params=params,
        cost_estimate=cost,
    )(x.reshape(B, N), p_sl.reshape(1, N))
    return out.reshape(B, S, D)


if __name__ == "__main__":
    # Module config (synthetic, deterministic): max_steps >= seq, max_dims >= D
    max_steps, max_dims = 16, 32
    B, S, D = 2, 8, 32

    # Built once at "module init", like the PyTorch buffer.
    P = build_positional_table(max_steps, max_dims)

    key = jax.random.PRNGKey(0)
    x = jax.random.normal(key, (B, S, D), dtype=jnp.float32)

    out = jax.block_until_ready(positional_encoding(x, P))

    # Reference check (pure JAX/numpy) to validate semantics.
    ref = x + P[:, :S, :D]
    np.testing.assert_allclose(np.asarray(out), np.asarray(ref), rtol=1e-6, atol=1e-6)

    print("KERNEL_OK")
</pallas_src>

<mosaic_0001>
module attributes {stable_mosaic.version = 11 : i64} {
  func.func @_pos_enc_kernel(%arg0: i32, %arg1: memref<2x8x32xf32, #tpu.memory_space<vmem>>, %arg2: memref<1x8x32xf32, #tpu.memory_space<vmem>>, %arg3: memref<2x8x32xf32, #tpu.memory_space<vmem>>) attributes {dimension_semantics = [#tpu.dimension_semantics<parallel>], iteration_bounds = array<i64: 1>, scalar_prefetch = 0 : i64, scratch_operands = 0 : i64, tpu.core_type = #tpu.core_type<tc>, window_params = [{transform_indices = @transform_0, window_bounds = array<i64: 2, 8, 32>}, {transform_indices = @transform_1, window_bounds = array<i64: 1, 8, 32>}, {transform_indices = @transform_2, window_bounds = array<i64: 2, 8, 32>}]} {
    %c0 = arith.constant 0 : index
    %c0_0 = arith.constant 0 : index
    %c0_1 = arith.constant 0 : index
    %0 = vector.load %arg1[%c0, %c0_0, %c0_1] : memref<2x8x32xf32, #tpu.memory_space<vmem>>, vector<2x8x32xf32>
    %c0_2 = arith.constant 0 : index
    %c0_3 = arith.constant 0 : index
    %c0_4 = arith.constant 0 : index
    %1 = vector.load %arg2[%c0_2, %c0_3, %c0_4] : memref<1x8x32xf32, #tpu.memory_space<vmem>>, vector<1x8x32xf32>
    %2 = vector.broadcast %1 : vector<1x8x32xf32> to vector<2x8x32xf32>
    %3 = arith.addf %0, %2 : vector<2x8x32xf32>
    %c0_5 = arith.constant 0 : index
    %c0_6 = arith.constant 0 : index
    %c0_7 = arith.constant 0 : index
    %4 = vector.load %arg3[%c0_5, %c0_6, %c0_7] : memref<2x8x32xf32, #tpu.memory_space<vmem>>, vector<2x8x32xf32>
    tpu.vector_store %arg3[%c0_5, %c0_6, %c0_7], %3 {strides = array<i32>} : memref<2x8x32xf32, #tpu.memory_space<vmem>>, vector<2x8x32xf32>,
    return
  }
  func.func @transform_0(%arg0: i32) -> (i32, i32, i32) {
    %c0_i32 = arith.constant 0 : i32
    %c0_i32_0 = arith.constant 0 : i32
    %c0_i32_1 = arith.constant 0 : i32
    return %c0_i32, %c0_i32_0, %arg0 : i32, i32, i32
  }
  func.func @transform_1(%arg0: i32) -> (i32, i32, i32) {
    %c0_i32 = arith.constant 0 : i32
    %c0_i32_0 = arith.constant 0 : i32
    %c0_i32_1 = arith.constant 0 : i32
    return %c0_i32, %c0_i32_0, %arg0 : i32, i32, i32
  }
  func.func @transform_2(%arg0: i32) -> (i32, i32, i32) {
    %c0_i32 = arith.constant 0 : i32
    %c0_i32_0 = arith.constant 0 : i32
    %c0_i32_1 = arith.constant 0 : i32
    return %c0_i32, %c0_i32_0, %arg0 : i32, i32, i32
  }
}

</mosaic_0001>

<bundles_post_ra>
// kernel: tpu_custom_call.1
= control target key start
LH: loop header
LB: loop body
LE: loop exit
PB: predicated region body
PF: predicated region fallthrough
CT: control target
= control target key end

     0   :  { %7 = vsyncpa [#allocation3], 0  ;;  %s203_s0 = inlined_call_operand.hbm [shape: f32[2,8,32], index: 0, kind: input, shape index: {}]   ;;  %s204_s1 = inlined_call_operand.hbm [shape: f32[1,8,32], index: 1, kind: input, shape index: {}]   ;;  %s205_s2 = inlined_call_operand.hbm [shape: f32[2,8,32], index: 2, kind: output, shape index: {}]  }
   0x1   :  { %8 = vsyncpa [#allocation6], 0 }
   0x2   :  { %9 = vsyncpa [#allocation4], 0  ;;  %s141_s9 = smov [#allocation2]   ;;  %s69_s13 = scalar_lea.hbm %s203_s0, 256 }
   0x3   :  { %s15_s10 = sshll.u32 %s141_s9, 4  ;;  %p70_p0 = scmp.ne.s32.totalorder %s203_s0, %s69_s13  ;;  %s16_s10 = int_to_ptr.vmem [resolvable:$true] %s15_s10 }
   0x4   :  { %p73_p1 = scmp.lt.u32.totalorder %s69_s13, %s203_s0 }
   0x6   :  { %p75_p2 = pnand %p73_p1, %p70_p0 }
   0x8   :  { %78 = shalt.err (!%p75_p2)
}
   0x9   :  { %s79_s18 = scalar_lea.vmem %s16_s10, 256  ;;  %p84_p4 = scmp.lt.s32.totalorder %s16_s10, %s16_s10 }
   0xa   :  { %p80_p3 = scmp.ne.s32.totalorder %s16_s10, %s79_s18  ;;  %p85_p5 = scmp.lt.s32.totalorder %s79_s18, %s79_s18 }
   0xc   :  { %p86_p6 = por %p85_p5, %p84_p4 }
   0xe   :  { %p87_p7 = pnand %p86_p6, %p80_p3 }
  0x10   :  { %90 = shalt.err (!%p87_p7)
}
  0x11   :  { %s142_s19 = smov 128   ;;  %s143_s20 = smov 8  }
  0x12   :  { %21 = dma.hbm_to_vmem [thread:$0]  %s203_s0, 256, %s16_s10, [#allocation3], %s142_s19, %s142_s19, %s143_s20  }
  0x13   :  { %s144_s23 = smov [#allocation5]   ;;  %s91_s27 = scalar_lea.hbm %s204_s1, 128 }
  0x14   :  { %s28_s24 = sshll.u32 %s144_s23, 4  ;;  %p92_p8 = scmp.ne.s32.totalorder %s204_s1, %s91_s27  ;;  %s29_s24 = int_to_ptr.vmem [resolvable:$true] %s28_s24 }
  0x15   :  { %p95_p9 = scmp.lt.u32.totalorder %s91_s27, %s204_s1 }
  0x17   :  { %p97_p10 = pnand %p95_p9, %p92_p8 }
  0x19   :  { %100 = shalt.err (!%p97_p10)
}
  0x1a   :  { %s101_s4 = scalar_lea.vmem %s29_s24, 128  ;;  %p106_p12 = scmp.lt.s32.totalorder %s29_s24, %s29_s24 }
  0x1b   :  { %p102_p11 = scmp.ne.s32.totalorder %s29_s24, %s101_s4  ;;  %p107_p13 = scmp.lt.s32.totalorder %s101_s4, %s101_s4 }
  0x1d   :  { %p108_p0 = por %p107_p13, %p106_p12 }
  0x1f   :  { %p109_p1 = pnand %p108_p0, %p102_p11 }
  0x21   :  { %112 = shalt.err (!%p109_p1)
}
  0x22   :  { %31 = dma.hbm_to_vmem [thread:$0]  %s204_s1, 128, %s29_s24, [#allocation6]  }
  0x23   :  { %135 = dma.done.wait [#allocation3], 256  }
  0x24   :  { %136 = vsyncadd [#allocation3], 4294967040 }
  0x25   :  { %137 = dma.done.wait [#allocation6], 128  }
  0x26   :  { %138 = vsyncadd [#allocation6], 4294967168  ;;  %s145_s6 = smov [#allocation7]   ;;  %v38_v0 = vld [vmem:[#allocation2] sm:$0xff]  ;;  %v40_v1 = vld [vmem:[#allocation5] sm:$0xff]  ;;  %vm43_vm0 = vcmask 261120  }
  0x27   :  { %s51_s7 = sshll.u32 %s145_s6, 4  ;;  %v39_v2 = vld [vmem:[#allocation2 + $0x8] sm:$0xff]  ;;  %v41_v3 = vadd.f32 %v40_v1, %v38_v0  ;;  %s52_s7 = int_to_ptr.vmem [resolvable:$true] %s51_s7 }
  0x28   :  { %v42_v4 = vadd.f32 %v40_v1, %v39_v2  ;;  %s113_s8 = scalar_lea.vmem %s52_s7, 256  ;;  %p118_p3 = scmp.lt.s32.totalorder %s52_s7, %s52_s7 }
  0x29   :  { %44 = vst.msk [vmem:[#allocation7] sm:$0xff] %vm43_vm0, %v41_v3  ;;  %p114_p2 = scmp.ne.s32.totalorder %s52_s7, %s113_s8  ;;  %p119_p4 = scmp.lt.s32.totalorder %s113_s8, %s113_s8 }
  0x2a   :  { %45 = vst.msk [vmem:[#allocation7 + $0x8] sm:$0xff] %vm43_vm0, %v42_v4 }
  0x2b   :  { %p120_p5 = por %p119_p4, %p118_p3 }
  0x2d   :  { %p121_p6 = pnand %p120_p5, %p114_p2 }
  0x2f   :  { %124 = shalt.err (!%p121_p6)
}
  0x30   :  { %s125_s10 = scalar_lea.hbm %s205_s2, 256 }
  0x31   :  { %p126_p7 = scmp.ne.s32.totalorder %s205_s2, %s125_s10  ;;  %p129_p8 = scmp.lt.u32.totalorder %s125_s10, %s205_s2 }
  0x33   :  { %p131_p9 = pnand %p129_p8, %p126_p7 }
  0x35   :  { %134 = shalt.err (!%p131_p9)
}
  0x36   :  { %57 = dma.vmem_to_hbm [thread:$0]  %s52_s7, 256, %s205_s2, [#allocation4], %s142_s19, %s142_s19, %s143_s20  }
  0x37   :  { %139 = dma.done.wait [#allocation4], 256  }
  0x38   :  { %140 = vsyncadd [#allocation4], 4294967040 }
  0x39   :  { %61 = vsyncpa [#allocation3], 1 }
  0x3a   :  { %62 = vsyncpa [#allocation6], 1 }
  0x3b   :  { %63 = vsyncpa [#allocation4], 1 }

</bundles_post_ra>
